<compile_context>
chip_gen: v7x
topology: tpu7x:2x2x1
jax: 0.10.0
libtpu: 0.0.40
codegen_flags: <defaults>
</compile_context>

<pallas_src>
import functools

import jax
import jax.numpy as jnp
from jax.experimental import pallas as pl
from jax.experimental.pallas import tpu as pltpu


# ----------------------------- kernels ------------------------------------ #

def _kernel_linear_shortcut(x_ref, w0_ref, b0_ref, w1_ref, ws_ref, b1_ref,
                            o_ref, *, compute_dtype):
    """Row tile, linear shortcut. Two accumulating dots instead of a concat."""
    x = x_ref[...]                                            # streamed dtype
    h0 = jnp.maximum(x, 0).astype(compute_dtype)              # relu(x)
    net = jnp.dot(h0, w0_ref[...],
                  preferred_element_type=jnp.float32) + b0_ref[...]   # fc_0
    h1 = jnp.maximum(net, 0.0).astype(compute_dtype)           # relu(net)
    out = jnp.dot(h1, w1_ref[...], preferred_element_type=jnp.float32)     # fc_1
    out = out + jnp.dot(x.astype(compute_dtype), ws_ref[...],
                        preferred_element_type=jnp.float32)             # shortcut
    out = out + b1_ref[...]
    o_ref[...] = out.astype(o_ref.dtype)


def _kernel_identity(x_ref, w0_ref, b0_ref, w1_ref, b1_ref, o_ref,
                     *, compute_dtype):
    """Row tile, identity shortcut (size_in == size_out)."""
    x = x_ref[...]
    h0 = jnp.maximum(x, 0).astype(compute_dtype)
    net = jnp.dot(h0, w0_ref[...],
                  preferred_element_type=jnp.float32) + b0_ref[...]
    h1 = jnp.maximum(net, 0.0).astype(compute_dtype)
    dx = jnp.dot(h1, w1_ref[...],
                 preferred_element_type=jnp.float32) + b1_ref[...]
    o_ref[...] = (x.astype(jnp.float32) + dx).astype(o_ref.dtype)


# --------------------------- helpers / prep -------------------------------- #

def _round_up(a, b):
    return (a + b - 1) // b * b


def _pad2(a, rows, cols):
    pr, pc = rows - a.shape[0], cols - a.shape[1]
    return jnp.pad(a, ((0, pr), (0, pc))) if (pr or pc) else a


def _vmem_capacity_bytes():
    try:
        cap = getattr(pltpu.get_tpu_info(), "vmem_capacity_bytes", None)
        if cap:
            return int(cap)
    except Exception:
        pass
    return 64 << 20   # conservative: v7x per-TensorCore VMEM


def prepare_params(params, *, compute_dtype=jnp.bfloat16):
    """One-time weight prep: pad feature dims to 128 multiples, cast to bf16.

    Weights stored (in, out) == PyTorch weight transposed. Zero padding keeps
    padded output columns exactly zero, so they can be sliced away."""
    w0, b0, w1, b1 = params["w0"], params["b0"], params["w1"], params["b1"]
    ws = params.get("ws", None)
    size_in, size_h = w0.shape
    size_out = w1.shape[1]
    assert w1.shape[0] == size_h
    in_p = _round_up(size_in, 128)
    h_p = _round_up(size_h, 128)
    out_p = _round_up(size_out, 128)

    prepped = {
        "w0": _pad2(jnp.asarray(w0, jnp.float32), in_p, h_p).astype(compute_dtype),
        "b0": jnp.pad(jnp.asarray(b0, jnp.float32), (0, h_p - size_h)).reshape(1, h_p),
        "w1": _pad2(jnp.asarray(w1, jnp.float32), h_p, out_p).astype(compute_dtype),
        "b1": jnp.pad(jnp.asarray(b1, jnp.float32), (0, out_p - size_out)).reshape(1, out_p),
        "dims": (size_in, size_h, size_out, in_p, h_p, out_p),
        "compute_dtype": compute_dtype,
    }
    if ws is not None:
        assert ws.shape == (size_in, size_out)
        prepped["ws"] = _pad2(jnp.asarray(ws, jnp.float32), in_p, out_p).astype(compute_dtype)
    else:
        assert size_in == size_out
    return prepped


# ------------------------------ forward ------------------------------------ #

def resnet_block_fc(x, prepped, *, tm=512):
    """Pallas forward of ResnetBlockFC. x: [..., size_in] -> [..., size_out]."""
    size_in, size_h, size_out, in_p, h_p, out_p = prepped["dims"]
    compute_dtype = prepped["compute_dtype"]
    assert x.shape[-1] == size_in

    lead_shape = x.shape[:-1]
    out_dtype = x.dtype
    x2 = x.reshape(-1, size_in)
    n = x2.shape[0]
    if n == 0:   # empty leading dims: nothing to compute
        return jnp.zeros(lead_shape + (size_out,), out_dtype)

    # Feature padding (lane-dense loads). Fuse the bf16 streaming cast into the
    # same op so the kernel reads half the bytes; skip both when already aligned.
    if in_p != size_in:
        x2 = jnp.pad(x2, ((0, 0), (0, in_p - size_in))).astype(compute_dtype)

    has_shortcut = "ws" in prepped

    # Row tile: >= 4 grid steps when n allows (2 per TensorCore on v7x),
    # multiple of 8 (sublane), capped at `tm`.
    tm_eff = max(8, min(tm, _round_up(pl.cdiv(n, 4), 8)))

    # Generation-aware VMEM budgeting. Weights counted double-buffered
    # (conservative: their index_map is constant but the default pipeliner may
    # still allocate two copies).
    w_item = jnp.dtype(compute_dtype).itemsize
    weight_bytes = (in_p * h_p + h_p * out_p) * w_item
    if has_shortcut:
        weight_bytes += in_p * out_p * w_item
    bias_bytes = (h_p + out_p) * 4
    x_item = jnp.dtype(x2.dtype).itemsize
    o_item = jnp.dtype(out_dtype).itemsize

    vmem_budget = int(_vmem_capacity_bytes() * 0.75)

    def vmem_need(t):
        io = 2 * t * (in_p * x_item + out_p * o_item)      # double-buffered tiles
        temps = t * (in_p + h_p + out_p) * 4               # f32 intermediates
        return 2 * weight_bytes + 2 * bias_bytes + io + temps + (2 << 20)

    while tm_eff > 8 and vmem_need(tm_eff) > vmem_budget:
        tm_eff = max(8, _round_up(tm_eff // 2, 8))

    grid = (pl.cdiv(n, tm_eff),)
    vmem_limit = int(min(max(vmem_need(tm_eff), 16 << 20), vmem_budget))

    x_spec = pl.BlockSpec((tm_eff, in_p), lambda i: (i, 0))
    w0_spec = pl.BlockSpec((in_p, h_p), lambda i: (0, 0))
    b0_spec = pl.BlockSpec((1, h_p), lambda i: (0, 0))
    w1_spec = pl.BlockSpec((h_p, out_p), lambda i: (0, 0))
    b1_spec = pl.BlockSpec((1, out_p), lambda i: (0, 0))
    out_spec = pl.BlockSpec((tm_eff, out_p), lambda i: (i, 0))

    if has_shortcut:
        kernel = functools.partial(_kernel_linear_shortcut,
                                   compute_dtype=compute_dtype)
        ws_spec = pl.BlockSpec((in_p, out_p), lambda i: (0, 0))
        in_specs = [x_spec, w0_spec, b0_spec, w1_spec, ws_spec, b1_spec]
        args = (x2, prepped["w0"], prepped["b0"], prepped["w1"],
                prepped["ws"], prepped["b1"])
        flops = 2 * n * (size_in * size_h + size_h * size_out
                         + size_in * size_out)
    else:
        kernel = functools.partial(_kernel_identity,
                                   compute_dtype=compute_dtype)
        in_specs = [x_spec, w0_spec, b0_spec, w1_spec, b1_spec]
        args = (x2, prepped["w0"], prepped["b0"], prepped["w1"], prepped["b1"])
        flops = 2 * n * (size_in * size_h + size_h * size_out)

    cost = pl.CostEstimate(
        flops=flops,
        transcendentals=0,
        bytes_accessed=int(n * in_p * x_item + n * out_p * o_item
                           + weight_bytes + bias_bytes),
    )

    out = pl.pallas_call(
        kernel,
        out_shape=jax.ShapeDtypeStruct((n, out_p), out_dtype),
        grid_spec=pltpu.PrefetchScalarGridSpec(
            num_scalar_prefetch=0,
            grid=grid,
            in_specs=in_specs,
            out_specs=out_spec,
        ),
        compiler_params=pltpu.CompilerParams(
            dimension_semantics=("parallel",),
            vmem_limit_bytes=vmem_limit,
        ),
        cost_estimate=cost,
    )(*args)

    if out_p != size_out:
        out = out[:, :size_out]
    return out.reshape(*lead_shape, size_out)


# --------------------------- reference + init ------------------------------ #

def resnet_block_fc_reference(x, params):
    """Pure-JAX reference matching the PyTorch forward exactly (f32)."""
    w0, b0, w1, b1 = params["w0"], params["b0"], params["w1"], params["b1"]
    ws = params.get("ws", None)
    h = jnp.maximum(x, 0.0)
    net = h @ w0 + b0
    net = jnp.maximum(net, 0.0)
    dx = net @ w1 + b1
    x_s = x @ ws if ws is not None else x
    return x_s + dx


def init_params(key, size_in, size_out=None, size_h=None):
    """Deterministic init mirroring ResnetBlockFC.__init__ shapes.

    fc_1.weight is zero-initialized exactly as in the PyTorch module."""
    if size_out is None:
        size_out = size_in
    if size_h is None:
        size_h = min(size_in, size_out)
    k0, kb0, kb1, ks = jax.random.split(key, 4)
    bound0 = 1.0 / (size_in ** 0.5)
    bound1 = 1.0 / (size_h ** 0.5)
    params = {
        # stored as (in, out) == PyTorch weight transposed
        "w0": jax.random.uniform(k0, (size_in, size_h), jnp.float32, -bound0, bound0),
        "b0": jax.random.uniform(kb0, (size_h,), jnp.float32, -bound0, bound0),
        "w1": jnp.zeros((size_h, size_out), jnp.float32),  # nn.init.zeros_(fc_1.weight)
        "b1": jax.random.uniform(kb1, (size_out,), jnp.float32, -bound1, bound1),
    }
    if size_in != size_out:
        params["ws"] = jax.random.uniform(
            ks, (size_in, size_out), jnp.float32, -bound0, bound0)
    return params


if __name__ == "__main__":
    key = jax.random.PRNGKey(0)
    kx, kp, kx2, kp2, kw = jax.random.split(key, 5)

    # size_in != size_out -> linear-shortcut kernel.
    B, P, size_in, size_out = 2, 8, 32, 64          # x: (2, 8, 32) -> 16 rows
    x = jax.random.normal(kx, (B, P, size_in), jnp.float32)
    params = init_params(kp, size_in, size_out)
    prepped = prepare_params(params)                # one-time weight prep
    out = jax.block_until_ready(resnet_block_fc(x, prepped))
    ref = resnet_block_fc_reference(x, params)
    assert out.shape == (B, P, size_out)
    assert jnp.allclose(out, ref, atol=2e-2, rtol=2e-2)  # bf16 MXU operands

    # Same block but with a non-zero fc_1 weight, to numerically exercise the
    # second matmul (the module's init zeroes it).
    size_h = min(size_in, size_out)
    params_nz = dict(params)
    params_nz["w1"] = 0.1 * jax.random.normal(kw, (size_h, size_out), jnp.float32)
    prepped_nz = prepare_params(params_nz)
    out_nz = jax.block_until_ready(resnet_block_fc(x, prepped_nz))
    ref_nz = resnet_block_fc_reference(x, params_nz)
    assert jnp.allclose(out_nz, ref_nz, atol=2e-2, rtol=2e-2)

    # size_in == size_out -> identity-shortcut kernel, odd row count
    # (exercises the partial last row-block / masked writes path).
    x_id = jax.random.normal(kx2, (3, 5, size_in), jnp.float32)  # 15 rows
    params_id = init_params(kp2, size_in)           # size_out=None -> size_in
    prepped_id = prepare_params(params_id)
    out_id = jax.block_until_ready(resnet_block_fc(x_id, prepped_id))
    ref_id = resnet_block_fc_reference(x_id, params_id)
    assert out_id.shape == (3, 5, size_in)
    assert jnp.allclose(out_id, ref_id, atol=2e-2, rtol=2e-2)

    print("KERNEL_OK")
</pallas_src>

<mosaic_0001>
module attributes {stable_mosaic.version = 11 : i64} {
  func.func @_kernel_linear_shortcut(%arg0: i32, %arg1: memref<8x128xbf16, #tpu.memory_space<vmem>>, %arg2: memref<128x128xbf16, #tpu.memory_space<vmem>>, %arg3: memref<1x128xf32, #tpu.memory_space<vmem>>, %arg4: memref<128x128xbf16, #tpu.memory_space<vmem>>, %arg5: memref<128x128xbf16, #tpu.memory_space<vmem>>, %arg6: memref<1x128xf32, #tpu.memory_space<vmem>>, %arg7: memref<8x128xf32, #tpu.memory_space<vmem>>) attributes {dimension_semantics = [#tpu.dimension_semantics<parallel>], iteration_bounds = array<i64: 2>, scalar_prefetch = 0 : i64, scratch_operands = 0 : i64, tpu.core_type = #tpu.core_type<tc>, window_params = [{transform_indices = @transform_0, window_bounds = array<i64: 8, 128>}, {pipeline_mode = #tpu.pipeline_mode<synchronous>, transform_indices = @transform_1, window_bounds = array<i64: 128, 128>}, {pipeline_mode = #tpu.pipeline_mode<synchronous>, transform_indices = @transform_2, window_bounds = array<i64: 1, 128>}, {pipeline_mode = #tpu.pipeline_mode<synchronous>, transform_indices = @transform_3, window_bounds = array<i64: 128, 128>}, {pipeline_mode = #tpu.pipeline_mode<synchronous>, transform_indices = @transform_4, window_bounds = array<i64: 128, 128>}, {pipeline_mode = #tpu.pipeline_mode<synchronous>, transform_indices = @transform_5, window_bounds = array<i64: 1, 128>}, {transform_indices = @transform_6, window_bounds = array<i64: 8, 128>}]} {
    %c0 = arith.constant 0 : index
    %c0_0 = arith.constant 0 : index
    %0 = vector.load %arg1[%c0, %c0_0] : memref<8x128xbf16, #tpu.memory_space<vmem>>, vector<8x128xbf16>
    %cst = arith.constant 0.000000e+00 : bf16
    %1 = vector.broadcast %cst : bf16 to vector<8x128xbf16>
    %2 = arith.maximumf %0, %1 : vector<8x128xbf16>
    %c0_1 = arith.constant 0 : index
    %c0_2 = arith.constant 0 : index
    %3 = vector.load %arg2[%c0_1, %c0_2] : memref<128x128xbf16, #tpu.memory_space<vmem>>, vector<128x128xbf16>
    %cst_3 = arith.constant dense<0.000000e+00> : vector<8x128xf32>
    %4 = tpu.matmul %2, %3, %cst_3 {dimension_numbers = #tpu.dot_dimension_numbers<[1], [0], [0], [1], [0, 0, 1, 1], [], []>} : vector<8x128xbf16>, vector<128x128xbf16>, vector<8x128xf32> -> vector<8x128xf32>
    %c0_4 = arith.constant 0 : index
    %c0_5 = arith.constant 0 : index
    %5 = vector.load %arg3[%c0_4, %c0_5] : memref<1x128xf32, #tpu.memory_space<vmem>>, vector<1x128xf32>
    %6 = vector.broadcast %5 : vector<1x128xf32> to vector<8x128xf32>
    %7 = arith.addf %4, %6 : vector<8x128xf32>
    %cst_6 = arith.constant 0.000000e+00 : f32
    %8 = vector.broadcast %cst_6 : f32 to vector<8x128xf32>
    %9 = arith.maximumf %7, %8 : vector<8x128xf32>
    %10 = arith.truncf %9 : vector<8x128xf32> to vector<8x128xbf16>
    %c0_7 = arith.constant 0 : index
    %c0_8 = arith.constant 0 : index
    %11 = vector.load %arg4[%c0_7, %c0_8] : memref<128x128xbf16, #tpu.memory_space<vmem>>, vector<128x128xbf16>
    %cst_9 = arith.constant dense<0.000000e+00> : vector<8x128xf32>
    %12 = tpu.matmul %10, %11, %cst_9 {dimension_numbers = #tpu.dot_dimension_numbers<[1], [0], [0], [1], [0, 0, 1, 1], [], []>} : vector<8x128xbf16>, vector<128x128xbf16>, vector<8x128xf32> -> vector<8x128xf32>
    %c0_10 = arith.constant 0 : index
    %c0_11 = arith.constant 0 : index
    %13 = vector.load %arg5[%c0_10, %c0_11] : memref<128x128xbf16, #tpu.memory_space<vmem>>, vector<128x128xbf16>
    %cst_12 = arith.constant dense<0.000000e+00> : vector<8x128xf32>
    %14 = tpu.matmul %0, %13, %cst_12 {dimension_numbers = #tpu.dot_dimension_numbers<[1], [0], [0], [1], [0, 0, 1, 1], [], []>} : vector<8x128xbf16>, vector<128x128xbf16>, vector<8x128xf32> -> vector<8x128xf32>
    %15 = arith.addf %12, %14 : vector<8x128xf32>
    %c0_13 = arith.constant 0 : index
    %c0_14 = arith.constant 0 : index
    %16 = vector.load %arg6[%c0_13, %c0_14] : memref<1x128xf32, #tpu.memory_space<vmem>>, vector<1x128xf32>
    %17 = vector.broadcast %16 : vector<1x128xf32> to vector<8x128xf32>
    %18 = arith.addf %15, %17 : vector<8x128xf32>
    %c0_15 = arith.constant 0 : index
    %c0_16 = arith.constant 0 : index
    %19 = vector.load %arg7[%c0_15, %c0_16] : memref<8x128xf32, #tpu.memory_space<vmem>>, vector<8x128xf32>
    tpu.vector_store %arg7[%c0_15, %c0_16], %18 {strides = array<i32>} : memref<8x128xf32, #tpu.memory_space<vmem>>, vector<8x128xf32>,
    return
  }
  func.func @transform_0(%arg0: i32) -> (i32, i32) {
    %c0_i32 = arith.constant 0 : i32
    %c0_i32_0 = arith.constant 0 : i32
    return %arg0, %c0_i32 : i32, i32
  }
  func.func @transform_1(%arg0: i32) -> (i32, i32) {
    %c0_i32 = arith.constant 0 : i32
    %c0_i32_0 = arith.constant 0 : i32
    %c0_i32_1 = arith.constant 0 : i32
    return %c0_i32, %c0_i32_0 : i32, i32
  }
  func.func @transform_2(%arg0: i32) -> (i32, i32) {
    %c0_i32 = arith.constant 0 : i32
    %c0_i32_0 = arith.constant 0 : i32
    %c0_i32_1 = arith.constant 0 : i32
    return %c0_i32, %c0_i32_0 : i32, i32
  }
  func.func @transform_3(%arg0: i32) -> (i32, i32) {
    %c0_i32 = arith.constant 0 : i32
    %c0_i32_0 = arith.constant 0 : i32
    %c0_i32_1 = arith.constant 0 : i32
    return %c0_i32, %c0_i32_0 : i32, i32
  }
  func.func @transform_4(%arg0: i32) -> (i32, i32) {
    %c0_i32 = arith.constant 0 : i32
    %c0_i32_0 = arith.constant 0 : i32
    %c0_i32_1 = arith.constant 0 : i32
    return %c0_i32, %c0_i32_0 : i32, i32
  }
  func.func @transform_5(%arg0: i32) -> (i32, i32) {
    %c0_i32 = arith.constant 0 : i32
    %c0_i32_0 = arith.constant 0 : i32
    %c0_i32_1 = arith.constant 0 : i32
    return %c0_i32, %c0_i32_0 : i32, i32
  }
  func.func @transform_6(%arg0: i32) -> (i32, i32) {
    %c0_i32 = arith.constant 0 : i32
    %c0_i32_0 = arith.constant 0 : i32
    return %arg0, %c0_i32 : i32, i32
  }
}

</mosaic_0001>

<bundles_post_ra>
// kernel: tpu_custom_call.1
= control target key start
LH: loop header
LB: loop body
LE: loop exit
PB: predicated region body
PF: predicated region fallthrough
CT: control target
= control target key end

     0   :  { %11 = vsyncpa [#allocation3], 0  ;;  %s1532_s0 = inlined_call_operand.hbm [shape: bf16[16,128], index: 0, kind: input, shape index: {}]   ;;  %s1533_s1 = inlined_call_operand.hbm [shape: bf16[128,128], index: 1, kind: input, shape index: {}]   ;;  %s1534_s2 = inlined_call_operand.vmem [shape: f32[1,128], index: 2, kind: input, shape index: {}]   ;;  %s1535_s3 = inlined_call_operand.hbm [shape: bf16[128,128], index: 3, kind: input, shape index: {}]   ;;  %s1536_s4 = inlined_call_operand.hbm [shape: bf16[128,128], index: 4, kind: input, shape index: {}]   ;;  %s1537_s5 = inlined_call_operand.vmem [shape: f32[1,128], index: 5, kind: input, shape index: {}]   ;;  %s1538_s6 = inlined_call_operand.hbm [shape: f32[16,128], index: 6, kind: output, shape index: {}]  }
   0x1   :  { %13 = vsyncpa [#allocation3 + $0x1], 0 }
   0x2   :  { %14 = vsyncpa [#allocation6], 0 }
   0x3   :  { %15 = vsyncpa [#allocation9], 0 }
   0x4   :  { %16 = vsyncpa [#allocation4], 0 }
   0x5   :  { %18 = vsyncpa [#allocation4 + $0x1], 0  ;;  %s1229_s21 = smov 0   ;;  %s1231_s22 = smov 0  }
   0x6   :  { %s1233_s23 = smov 0   ;;  %s1235_s24 = smov 0  }
   0x7 LB: > { %s1250_s25 = sadd.s32 4294967295, %s1182_s24   ;;  %s757_s26 = sadd.s32 4294967294, %s1182_s24   ;;  %s1182_s24 = sphi %s1235_s24, %s1561_s24   ;;  %s1178_s23 = sphi %s1233_s23, %s1560_s23   ;;  %s1174_s22 = sphi %s1231_s22, %s1559_s22   ;;  %s1170_s21 = sphi %s1229_s21, %s1558_s21  }
   0x8   : > { %p44_p0 = scmp.ne.s32.totalorder %s1174_s22, %s1170_s21  ;;  %p1539_p1 = scmp.eq.s32.totalorder %s1250_s25, 0 }
   0x9   : > { %p179_p3 = scmp.eq.s32.totalorder %s757_s26, 1  ;;  %p758_p5 = scmp.ge.s32.totalorder %s1182_s24, 1 }
   0xa   : > { %p1259_p4 = por %p1539_p1, %p44_p0  ;;  %p186_p7 = scmp.lt.s32.totalorder %s1182_s24, 3 }
   0xb   : > { %p1264_p6 = por %p179_p3, %p44_p0  ;;  %s1184_s30 = smov [#allocation5]  }
   0xc   : > { %s1542_s27 = scalar_select %p1259_p4, 1, 0 }
   0xd   : > { %s1543_s28 = scalar_select %p1264_p6, 1, 0 }
   0xe   : > { %p1269_p8 = pnand %p758_p5, %p186_p7  ;;  %s198_s7 = sshll.u32 %s1184_s30, 4  ;;  %s1273_s7 = int_to_ptr.vmem [resolvable:$true] %s198_s7 }
   0xf   : > { %s1185_s9 = smov [#allocation7]   ;;  %s1186_s11 = smov [#allocation8]  }
  0x10   : > { %s1544_s29 = scalar_select %p1269_p8, 1, 0 }
  0x11   : > { %p904_p9 = pneg %p1269_p8  ;;  %s214_s10 = sshll.u32 %s1185_s9, 4  ;;  %s1284_s10 = int_to_ptr.vmem [resolvable:$true] %s214_s10 }
  0x12   : > { %s1286_s12 = sshll.u32 %s1186_s11, 4  ;;  %s994_s15 = scalar_lea.hbm %s1533_s1, 1024  ;;  %s228_s12 = int_to_ptr.vmem [resolvable:$true] %s1286_s12 }
  0x13   : > { %p1280_p11 = pnand %p904_p9, %p1539_p1  ;;  %p995_p12 = scmp.ne.s32.totalorder %s1533_s1, %s994_s15 }
  0x14   : > { %p1001_p5 = scmp.lt.u32.totalorder %s994_s15, %s1533_s1 }
  0x15   : > { %p1296_p13 = pneg %p1280_p11 }
  0x17   : > { %p997_p0 = pnand %p1296_p13, %p995_p12 }
  0x19   : > { %p998_p3 = pneg %p997_p0 }
  0x1b   : > { %p1003_p7 = pnand %p1001_p5, %p998_p3 }
  0x1d   : > { %1006 = shalt.err (!%p1003_p7)
}
  0x1e   : > { %s1007_s26 = scalar_lea.vmem %s1273_s7, 1024  ;;  %p1015_p2 = scmp.lt.s32.totalorder %s1273_s7, %s1273_s7 }
  0x1f   : > { %p1008_p9 = scmp.ne.s32.totalorder %s1273_s7, %s1007_s26  ;;  %p1016_p6 = scmp.lt.s32.totalorder %s1007_s26, %s1007_s26 }
  0x21   : > { %p1010_p10 = pnand %p1008_p9, %p1296_p13  ;;  %p1017_p12 = por %p1016_p6, %p1015_p2 }
  0x23   : > { %p1011_p1 = pneg %p1010_p10 }
  0x25   : > { %p1018_p0 = pnand %p1017_p12, %p1011_p1 }
  0x27   : > { %1021 = shalt.err (!%p1018_p0)
}
  0x28   : > { %s1187_s30 = smov 64   ;;  %s1188_s9 = smov 4  }
  0x29   : > { %907 = dma.hbm_to_vmem [thread:$0]  (!%p1280_p11), %s1533_s1, 1024, %s1273_s7, [#allocation6], %s1187_s30, %s1187_s30, %s1188_s9  }
  0x2a   : > { %s1022_s16 = scalar_lea.hbm %s1535_s3, 1024 }
  0x2b   : > { %p1023_p1 = scmp.ne.s32.totalorder %s1535_s3, %s1022_s16  ;;  %p1029_p10 = scmp.lt.u32.totalorder %s1022_s16, %s1535_s3 }
  0x2d   : > { %p1025_p2 = pnand %p1023_p1, %p1296_p13 }
  0x2f   : > { %p1026_p6 = pneg %p1025_p2 }
  0x31   : > { %p1031_p3 = pnand %p1029_p10, %p1026_p6 }
  0x33   : > { %1034 = shalt.err (!%p1031_p3)
}
  0x34   : > { %s1035_s7 = scalar_lea.vmem %s1284_s10, 1024  ;;  %p1043_p12 = scmp.lt.s32.totalorder %s1284_s10, %s1284_s10 }
  0x35   : > { %p1036_p5 = scmp.ne.s32.totalorder %s1284_s10, %s1035_s7  ;;  %p1044_p0 = scmp.lt.s32.totalorder %s1035_s7, %s1035_s7 }
  0x37   : > { %p1038_p7 = pnand %p1036_p5, %p1296_p13  ;;  %p1045_p1 = por %p1044_p0, %p1043_p12 }
  0x39   : > { %p1039_p9 = pneg %p1038_p7 }
  0x3b   : > { %p1046_p2 = pnand %p1045_p1, %p1039_p9 }
  0x3d   : > { %1049 = shalt.err (!%p1046_p2)
}
  0x3e   : > { %910 = dma.hbm_to_vmem [thread:$0]  (!%p1280_p11), %s1535_s3, 1024, %s1284_s10, [#allocation6], %s1187_s30, %s1187_s30, %s1188_s9  }
  0x3f   : > { %s1050_s16 = scalar_lea.hbm %s1536_s4, 1024 }
  0x40   : > { %p1051_p6 = scmp.ne.s32.totalorder %s1536_s4, %s1050_s16  ;;  %p1057_p5 = scmp.lt.u32.totalorder %s1050_s16, %s1536_s4 }
  0x42   : > { %p1053_p10 = pnand %p1051_p6, %p1296_p13 }
  0x44   : > { %p1054_p3 = pneg %p1053_p10 }
  0x46   : > { %p1059_p7 = pnand %p1057_p5, %p1054_p3 }
  0x48   : > { %1062 = shalt.err (!%p1059_p7)
}
  0x49   : > { %s1063_s7 = scalar_lea.vmem %s228_s12, 1024  ;;  %p1071_p1 = scmp.lt.s32.totalorder %s228_s12, %s228_s12 }
  0x4a   : > { %p1064_p9 = scmp.ne.s32.totalorder %s228_s12, %s1063_s7  ;;  %p1072_p2 = scmp.lt.s32.totalorder %s1063_s7, %s1063_s7 }
  0x4c   : > { %p1066_p12 = pnand %p1064_p9, %p1296_p13  ;;  %p1073_p4 = por %p1072_p2, %p1071_p1 }
  0x4e   : > { %p1067_p0 = pneg %p1066_p12 }
  0x50   : > { %p1074_p8 = pnand %p1073_p4, %p1067_p0 }
  0x52   : > { %1077 = shalt.err (!%p1074_p8)
}
  0x53   : > { %913 = dma.hbm_to_vmem [thread:$0]  (!%p1280_p11), %s1536_s4, 1024, %s228_s12, [#allocation9], %s1187_s30, %s1187_s30, %s1188_s9  }
  0x54   : > { %s1369_s18 = sadd.s32 1, %s1182_s24   ;;  %s31_s13 = sadd.s32 1, %s1178_s23 }
  0x55   : > { %s28_s8 = ssub.s32 %s1182_s24, %s1369_s18  ;;  %p38_p8 = scmp.ne.s32.totalorder %s1178_s23, %s1174_s22 }
  0x56   : > { %p29_p4 = scmp.eq.s32.totalorder %s28_s8, 0  ;;  %p39_p13 = scmp.eq.s32.totalorder %s1182_s24, 0 }
  0x57   : > { %p925_p6 = scmp.lt.s32.totalorder %s1182_s24, 2  ;;  %p1547_p3 = scmp.eq.s32.totalorder %s1250_s25, 1 }
  0x58   : > { %s1379_s14 = scalar_select %p29_p4, %s1178_s23, %s31_s13  }
  0x59   : > { %p40_p10 = por %p39_p13, %p38_p8  ;;  %p1383_p5 = por %p1547_p3, %p38_p8 }
  0x5a   : > { %s244_s16 = sand.u32 1, %s1178_s23   ;;  %s764_s17 = sshll.u32 %s1182_s24, 6 }
  0x5b   : > { %s763_s12 = sshll.u32 %s244_s16, 2  ;;  %s1392_s19 = scalar_lea.hbm %s1532_s0, %s764_s17 }
  0x5c   : > { %s248_s20 = scalar_lea.vmem [#allocation2], %s763_s12  ;;  %p1394_p11 = pnand %p925_p6, %p40_p10 }
  0x5d   : > { %s255_s26 = sshll.u32 %s248_s20, 4  ;;  %s245_s10 = scalar_lea.sflag [#allocation3], %s244_s16  ;;  %s1398_s26 = int_to_ptr.vmem [resolvable:$true] %s255_s26 }
  0x5e   : > { %s1078_s11 = scalar_lea.hbm %s1392_s19, 64  ;;  %p1080_p9 = pneg %p1394_p11 }
  0x5f   : > { %p1079_p7 = scmp.ne.s32.totalorder %s1392_s19, %s1078_s11  ;;  %s1083_s17 = scalar_lea.hbm %s1532_s0, 128 }
  0x60   : > { %p1084_p1 = scmp.lt.u32.totalorder %s1392_s19, %s1532_s0  ;;  %p1085_p2 = scmp.lt.u32.totalorder %s1083_s17, %s1078_s11 }
  0x61   : > { %p1081_p12 = pnand %p1080_p9, %p1079_p7  ;;  %p1087_p8 = scmp.lt.u32.totalorder %s1078_s11, %s1392_s19 }
  0x62   : > { %p1086_p4 = por %p1085_p2, %p1084_p1 }
  0x63   : > { %p1082_p0 = pneg %p1081_p12 }
  0x64   : > { %p1088_p13 = por %p1087_p8, %p1086_p4 }
  0x66   : > { %p1089_p6 = pnand %p1088_p13, %p1082_p0 }
  0x68   : > { %1092 = shalt.err (!%p1089_p6)
}
  0x69   : > { %s1093_s16 = scalar_lea.vmem %s1398_s26, 64  ;;  %s1189_s9 = smov [#allocation2]  }
  0x6a   : > { %p1094_p10 = scmp.ne.s32.totalorder %s1398_s26, %s1093_s16  ;;  %s1098_s20 = sshll.u32 %s1189_s9, 4  ;;  %s1099_s20 = int_to_ptr.vmem [resolvable:$false] %s1098_s20 }
  0x6b   : > { %s1100_s8 = scalar_lea.vmem %s1099_s20, 128  ;;  %p1101_p12 = scmp.lt.s32.totalorder %s1398_s26, %s1099_s20 }
  0x6c   : > { %p1096_p3 = pnand %p1094_p10, %p1080_p9  ;;  %p1102_p1 = scmp.lt.s32.totalorder %s1100_s8, %s1093_s16 }
  0x6e   : > { %p1097_p7 = pneg %p1096_p3  ;;  %p1103_p2 = por %p1102_p1, %p1101_p12 }
  0x70   : > { %p1104_p4 = pnand %p1103_p2, %p1097_p7 }
  0x72   : > { %1107 = shalt.err (!%p1104_p4)
}
  0x73   : > { %917 = dma.hbm_to_vmem [thread:$0]  (!%p1394_p11), %s1392_s19, 64, %s1398_s26, %s245_s10  }
  0x74   : > { %p1550_p0 = scmp.ne.s32.totalorder %s1544_s29, 0 }
  0x75   : > { %s1428_s11 = sand.u32 (!%p1550_p0), 1, %s1174_s22   ;;  %p1551_p9 = scmp.ne.s32.totalorder (!%p1550_p0), %s1542_s27, 0 }
  0x76   : > { %264 = sbr.rel (%p1550_p0) target bundleno = 615 (0x267), region = 44  ;;  %s766_s13 = sshll.u32 (!%p1550_p0), %s1428_s11, 2 }
  0x77   : > { %s267_s17 = scalar_lea.sflag (!%p1550_p0), [#allocation3], %s1428_s11  ;;  %s1432_s12 = scalar_lea.vmem (!%p1550_p0), [#allocation2], %s766_s13 }
  0x7d   : > { %1153 = dma.done.wait (%p1551_p9), %s267_s17, 64  }
  0x7e   : > { %1155 = vsyncadd (%p1551_p9), %s267_s17, 4294967232  ;;  %p1552_p11 = scmp.eq.s32.totalorder %s1250_s25, 0 }
  0x80   : > { %1157 = dma.done.wait (%p1552_p11), [#allocation6], 2048   ;;  %p1553_p8 = pmov %p1552_p11 }
  0x82   : > { %1159 = vsyncadd (%p1553_p8), [#allocation6], 4294965248  ;;  %p1554_p13 = pmov %p1553_p8 }
  0x83   : > { %p1555_p6 = pmov %p1553_p8 }
  0x84   : > { %1161 = dma.done.wait (%p1554_p13), [#allocation9], 1024  }
  0x85   : > { %1163 = vsyncadd (%p1555_p6), [#allocation9], 4294966272  ;;  %v1190_v0 = vmov 0.0   ;;  %vm1191_vm0 = vmmov 0   ;;  %v970_v1 = vld [vmem:[#allocation5] sm:$0xff]   ;;  %v971_v2 = vld [vmem:[#allocation5 + $0x8] sm:$0xff]  }
  0x86   : > { %828 = vmatprep.subr.bf16.mxu0 %v1190_v0  ;;  %844 = vmatprep.mubr.msk.bf16.mxu0 %vm1191_vm0, %v1190_v0  ;;  %v972_v3 = vld [vmem:[#allocation5 + $0x10] sm:$0xff]   ;;  %v978_v4 = vld [vmem:[#allocation8] sm:$0xff]   ;;  %v973_v5 = vld [vmem:[#allocation5 + $0x18] sm:$0xff]   ;;  %v1192_v16 = vmov 0   ;;  %s770_s19 = sshll.u32 %s1428_s11, 3  ;;  %s798_s10 = sshll.u32 %s1250_s25, 7 }
  0x87   : > { %848 = vmatprep.subr.bf16.mxu1 %v1190_v0  ;;  %864 = vmatprep.mubr.msk.bf16.mxu1 %vm1191_vm0, %v1190_v0  ;;  %v980_v6 = vld [vmem:[#allocation8 + $0x8] sm:$0xff]   ;;  %v974_v7 = vld [vmem:[#allocation5 + $0x20] sm:$0xff]   ;;  %v982_v8 = vld [vmem:[#allocation8 + $0x10] sm:$0xff]   ;;  %s310_s30 = scalar_lea.vmem [#allocation10], %s770_s19  ;;  %s1488_s8 = scalar_lea.hbm %s1538_s6, %s798_s10 }
  0x88   : > { %829 = vmatpush3.bf16.msra.mxu0 %v970_v1  ;;  %849 = vmatpush3.bf16.msra.mxu1 %v978_v4  ;;  %v975_v9 = vld [vmem:[#allocation5 + $0x28] sm:$0xff]   ;;  %v984_v10 = vld [vmem:[#allocation8 + $0x18] sm:$0xff]   ;;  %v976_v11 = vld [vmem:[#allocation5 + $0x30] sm:$0xff]   ;;  %s658_s16 = sshll.u32 %s310_s30, 4  ;;  %s645_s13 = scalar_lea.sflag [#allocation4], %s1428_s11  ;;  %s1490_s16 = int_to_ptr.vmem [resolvable:$true] %s658_s16 }
  0x89   : > { %830 = vmatprep.subr.bf16.mxu0 %v1190_v0  ;;  %850 = vmatprep.subr.bf16.mxu1 %v1190_v0  ;;  %v986_v12 = vld [vmem:[#allocation8 + $0x20] sm:$0xff]   ;;  %v977_v13 = vld [vmem:[#allocation5 + $0x38] sm:$0xff]   ;;  %v988_v15 = vld [vmem:[#allocation8 + $0x28] sm:$0xff]   ;;  %s1108_s25 = scalar_lea.vmem %s1490_s16, 128  ;;  %s1193_s17 = smov [#allocation10]  }
  0x8a   : > { %v312_v14 = vld [vmem:[%s1432_s12] sm:$0xf]  ;;  %v979_v18 = vld [vmem:[#allocation7] sm:$0xff]   ;;  %v990_v19 = vld [vmem:[#allocation8 + $0x30] sm:$0xff]   ;;  %p1109_p10 = scmp.ne.s32.totalorder %s1490_s16, %s1108_s25  ;;  %s1112_s12 = sshll.u32 %s1193_s17, 4  ;;  %s1113_s12 = int_to_ptr.vmem [resolvable:$false] %s1112_s12 }
  0x8b   : > { %v313_v17 = vmax.bf16 %v1192_v16, %v312_v14  ;;  %v981_v20 = vld [vmem:[#allocation7 + $0x8] sm:$0xff]   ;;  %v983_v21 = vld [vmem:[#allocation7 + $0x10] sm:$0xff]   ;;  %v985_v22 = vld [vmem:[#allocation7 + $0x18] sm:$0xff]   ;;  %s1114_s27 = scalar_lea.vmem %s1113_s12, 256  ;;  %p1115_p12 = scmp.lt.s32.totalorder %s1490_s16, %s1113_s12 }
  0x8c   : > { %831 = vmatpush3.bf16.msra.mxu0 %v971_v2  ;;  %851 = vmatpush3.bf16.msra.mxu1 %v980_v6  ;;  %v987_v23 = vld [vmem:[#allocation7 + $0x20] sm:$0xff]   ;;  %v989_v24 = vld [vmem:[#allocation7 + $0x28] sm:$0xff]   ;;  %v991_v25 = vld [vmem:[#allocation7 + $0x30] sm:$0xff]   ;;  %p1110_p3 = pnand %p1109_p10, %p1383_p5  ;;  %p1116_p1 = scmp.lt.s32.totalorder %s1114_s27, %s1108_s25 }
  0x8d   : > { %832 = vmatprep.subr.bf16.mxu0 %v1190_v0  ;;  %852 = vmatprep.subr.bf16.mxu1 %v1190_v0  ;;  %v992_v26 = vld [vmem:[#allocation8 + $0x38] sm:$0xff]  }
  0x8e   : > { %v993_v27 = vld [vmem:[#allocation7 + $0x38] sm:$0xff]   ;;  %p1111_p7 = pneg %p1110_p3  ;;  %p1117_p2 = por %p1116_p1, %p1115_p12 }
  0x8f   : > { %v771_v28 = vld [vmem:[%s1534_s2] ss:$0 sm:$0xff] }
  0x90   : > { %833 = vmatpush3.bf16.msra.mxu0 %v972_v3  ;;  %853 = vmatpush3.bf16.msra.mxu1 %v982_v8  ;;  %v796_v41 = vld [vmem:[%s1537_s5] ss:$0 sm:$0xff]  ;;  %p1118_p4 = pnand %p1117_p2, %p1111_p7 }
  0x91   : > { %834 = vmatprep.subr.bf16.mxu0 %v1190_v0  ;;  %854 = vmatprep.subr.bf16.mxu1 %v1190_v0 }
  0x94   : > { %835 = vmatpush3.bf16.msra.mxu0 %v973_v5  ;;  %855 = vmatpush3.bf16.msra.mxu1 %v984_v10 }
  0x95   : > { %836 = vmatprep.subr.bf16.mxu0 %v1190_v0  ;;  %856 = vmatprep.subr.bf16.mxu1 %v1190_v0 }
  0x98   : > { %837 = vmatpush3.bf16.msra.mxu0 %v974_v7  ;;  %857 = vmatpush3.bf16.msra.mxu1 %v986_v12 }
  0x99   : > { %838 = vmatprep.subr.bf16.mxu0 %v1190_v0  ;;  %858 = vmatprep.subr.bf16.mxu1 %v1190_v0 }
  0x9c   : > { %839 = vmatpush3.bf16.msra.mxu0 %v975_v9  ;;  %859 = vmatpush3.bf16.msra.mxu1 %v988_v15 }
  0x9d   : > { %840 = vmatprep.subr.bf16.mxu0 %v1190_v0  ;;  %860 = vmatprep.subr.bf16.mxu1 %v1190_v0 }
  0xa0   : > { %841 = vmatpush3.bf16.msra.mxu0 %v976_v11  ;;  %861 = vmatpush3.bf16.msra.mxu1 %v990_v19 }
  0xa1   : > { %842 = vmatprep.subr.bf16.mxu0 %v1190_v0  ;;  %862 = vmatprep.subr.bf16.mxu1 %v1190_v0 }
  0xa4   : > { %843 = vmatpush3.bf16.msra.mxu0 %v977_v13  ;;  %863 = vmatpush3.bf16.msra.mxu1 %v992_v26 }
  0xa5   : > { %868 = vmatprep.subr.bf16.mxu0 %v1190_v0 }
  0xa7   : > { %845 = vmatmul.mubr.bf16.vlgmr.msra.gmra.mrb[0].mxu0 %v313_v17  ;;  %865 = vmatmul.mubr.bf16.vlgmr.msra.gmra.mrb[0].mxu1 %v312_v14 }
  0xa8   : > { %869 = vmatpush3.bf16.msra.mxu0 %v979_v18  ;;  %884 = vmatprep.mubr.msk.bf16.mxu0 %vm1191_vm0, %v1190_v0 }
  0xa9   : > { %870 = vmatprep.subr.bf16.mxu0 %v1190_v0 }
  0xac   : > { %871 = vmatpush3.bf16.msra.mxu0 %v981_v20 }
  0xad   : > { %872 = vmatprep.subr.bf16.mxu0 %v1190_v0 }
  0xb0   : > { %873 = vmatpush3.bf16.msra.mxu0 %v983_v21 }
  0xb1   : > { %874 = vmatprep.subr.bf16.mxu0 %v1190_v0 }
  0xb4   : > { %875 = vmatpush3.bf16.msra.mxu0 %v985_v22 }
  0xb5   : > { %876 = vmatprep.subr.bf16.mxu0 %v1190_v0 }
  0xb8   : > { %877 = vmatpush3.bf16.msra.mxu0 %v987_v23 }
  0xb9   : > { %878 = vmatprep.subr.bf16.mxu0 %v1190_v0 }
  0xbc   : > { %879 = vmatpush3.bf16.msra.mxu0 %v989_v24 }
  0xbd   : > { %880 = vmatprep.subr.bf16.mxu0 %v1190_v0 }
  0xc0   : > { %881 = vmatpush3.bf16.msra.mxu0 %v991_v25 }
  0xc1   : > { %882 = vmatprep.subr.bf16.mxu0 %v1190_v0 }
  0xc4   : > { %883 = vmatpush3.bf16.msra.mxu0 %v993_v27 }
 0x17a   : > { %v419_v29 = vpop.f32.mrb[0].mxu0  ;;  %v541_v36 = vpop.f32.mrb[0].mxu1 }
 0x17b   : > { %v420_v30 = vadd.f32 %v771_v28, %v419_v29  ;;  %v846_v31 = vpop.f32.mrb[1].mxu0  ;;  %v866_v37 = vpop.f32.mrb[1].mxu1 }
 0x17c   : > { %v422_v32 = vpop.f32.mrb[2].mxu0  ;;  %v544_v38 = vpop.f32.mrb[2].mxu1 }
 0x17d   : > { %v425_v33 = vmax.f32 %v420_v30, 0.0  ;;  %v847_v34 = vpop.f32.mrb[3].mxu0  ;;  %v867_v39 = vpop.f32.mrb[3].mxu1 }
 0x17f   : > { %v426_v35 = vpack.c.bf16 %v425_v33, %v425_v33 }
 0x181   : > { %885 = vmatmul.mubr.bf16.vlgmr.msra.gmra.mrb[4].mxu0 %v426_v35 }
 0x254   : > { %v629_v40 = vpop.f32.mrb[4].mxu0 }
 0x255   : > { %v630_v42 = vadd.f32 %v629_v40, %v541_v36  ;;  %v886_v43 = vpop.f32.mrb[5].mxu0 }
 0x256   : > { %v632_v44 = vpop.f32.mrb[6].mxu0 }
 0x257   : > { %v642_v45 = vadd.f32 %v796_v41, %v630_v42  ;;  %v887_v46 = vpop.f32.mrb[7].mxu0 }
 0x259   : > { %643 = vst [vmem:[%s310_s30] sm:$0xff] %v642_v45 }
 0x25a   : > { %1121 = shalt.err (!%p1118_p4)
}
 0x25b   : > { %s1122_s11 = scalar_lea.hbm %s1488_s8, 128  ;;  %s1126_s26 = scalar_lea.hbm %s1538_s6, 256 }
 0x25c   : > { %p1123_p0 = scmp.ne.s32.totalorder %s1488_s8, %s1122_s11  ;;  %p1127_p8 = scmp.lt.u32.totalorder %s1488_s8, %s1538_s6 }
 0x25d   : > { %p1128_p13 = scmp.lt.u32.totalorder %s1126_s26, %s1122_s11  ;;  %p1130_p10 = scmp.lt.u32.totalorder %s1122_s11, %s1488_s8 }
 0x25e   : > { %p1124_p9 = pnand %p1123_p0, %p1383_p5 }
 0x25f   : > { %p1129_p6 = por %p1128_p13, %p1127_p8 }
 0x260   : > { %p1125_p11 = pneg %p1124_p9 }
 0x261   : > { %p1131_p3 = por %p1130_p10, %p1129_p6 }
 0x263   : > { %p1132_p7 = pnand %p1131_p3, %p1125_p11 }
 0x265   : > { %1135 = shalt.err (!%p1132_p7)
}
 0x266   : > { %902 = dma.vmem_to_hbm [thread:$0]  (%p1383_p5), %s1490_s16, 128, %s1488_s8, %s645_s13  }
 0x267 PF: > { %s670_s30 = sand.u32 1, %s1170_s21   ;;  %p1556_p12 = scmp.ne.s32.totalorder %s1543_s28, 0 }
 0x268   : > { %p1557_p1 = scmp.ge.s32.totalorder %s1182_s24, 2  ;;  %s671_s9 = scalar_lea.sflag [#allocation4], %s670_s30 }
 0x26a   : > { %p919_p2 = pnand %p1557_p1, %p1556_p12 }
 0x26c   : > { %1165 = dma.done.wait (!%p919_p2), %s671_s9, 128  }
 0x26d   : > { %1167 = vsyncadd (!%p919_p2), %s671_s9, 4294967168  ;;  %p21_p4 = scmp.ge.s32.totalorder %s1369_s18, 4   ;;  %s1558_s21 = smov %s1174_s22 }
 0x26e   : > { %s1559_s22 = smov %s1178_s23  ;;  %s1560_s23 = smov %s1379_s14 }
 0x26f   : > { %s1561_s24 = smov %s1369_s18  ;;  %23 = sbr.rel (!%p21_p4) target bundleno = 7 (0x7), region = 101 }
 0x276   :  { %676 = vsyncpa [#allocation3], 1 }
 0x277   :  { %678 = vsyncpa [#allocation3 + $0x1], 1 }
 0x278   :  { %679 = vsyncpa [#allocation6], 1 }
 0x279   :  { %680 = vsyncpa [#allocation9], 1 }
 0x27a   :  { %681 = vsyncpa [#allocation4], 1 }
 0x27b   :  { %683 = vsyncpa [#allocation4 + $0x1], 1 }

</bundles_post_ra>
